<compile_context>
chip_gen: v6e
topology: v6e:2x2x1
jax: 0.10.0
libtpu: 0.0.40
codegen_flags: <defaults>
</compile_context>

<pallas_src>
import functools

import jax
import jax.numpy as jnp
from jax.experimental import pallas as pl
from jax.experimental.pallas import tpu as pltpu

LANE = 128
BATCH_QUANTUM = 16                      # bf16 packs 2 rows per sublane
MAX_BATCH_TILE = 1024                   # rows per grid step
VMEM_LIMIT_BYTES = 32 * 1024 * 1024     # fits v5e/v6e/v7x scoped VMEM


def _round_up(x, m):
    return (x + m - 1) // m * m


def _cdiv(a, b):
    return (a + b - 1) // b


def _batch_tile(batch):
    """Near-equal batch tiles (16-row quantum); >= 2 grid steps for big batches."""
    b = max(int(batch), 1)
    n_tiles = max(1, _cdiv(b, MAX_BATCH_TILE))
    if n_tiles < 2 and b >= 2 * BATCH_QUANTUM:
        n_tiles = 2                     # let both v7x TensorCores get work
    return min(_round_up(_cdiv(b, n_tiles), BATCH_QUANTUM), MAX_BATCH_TILE)


# ----------------------------------------------------------------------------
# Kernels
# ----------------------------------------------------------------------------
def _mlp_actor_kernel(obs_ref, w1_ref, b1_ref, w2_ref, b2_ref, w3_ref, b3_ref,
                      out_ref):
    """3-layer MLP with Tanh (vector-observation BoxActor).

    obs arrives f32 and is cast to bf16 in-kernel; hidden weights are bf16 with
    f32 MXU accumulation; bias add + tanh stay f32 (v5e-safe); the final layer
    is computed fully in f32 for fidelity to the PyTorch module.
    """
    x = obs_ref[...].astype(jnp.bfloat16)                       # (TB, F)
    h1 = jnp.dot(x, w1_ref[...], preferred_element_type=jnp.float32) + b1_ref[...]
    h1 = jnp.tanh(h1).astype(jnp.bfloat16)
    h2 = jnp.dot(h1, w2_ref[...], preferred_element_type=jnp.float32) + b2_ref[...]
    h2 = jnp.tanh(h2)                                           # f32 for last layer
    mu = jnp.dot(h2, w3_ref[...], preferred_element_type=jnp.float32) + b3_ref[...]
    out_ref[...] = mu                                           # (TB, A_pad) f32, lane-dense


def _linear_actor_kernel(obs_ref, w_ref, b_ref, out_ref):
    """Single Linear (image-observation BoxActor, features already extracted) — f32."""
    out_ref[...] = jnp.dot(obs_ref[...], w_ref[...],
                           preferred_element_type=jnp.float32) + b_ref[...]


# ----------------------------------------------------------------------------
# Wrappers (pallas_call plumbing)
# ----------------------------------------------------------------------------
@functools.partial(jax.jit, static_argnames=("action_dim",))
def box_actor_forward_mlp(obs, w1, b1, w2, b2, w3, b3, *, action_dim):
    B, F = obs.shape
    H_pad = w1.shape[1]
    A_pad = w3.shape[1]
    TB = _batch_tile(B)

    flops = 2 * B * (F * H_pad + H_pad * H_pad + H_pad * A_pad)
    bytes_accessed = (B * F * 4                                  # obs f32
                      + 2 * (F * H_pad + H_pad * H_pad)          # bf16 hidden weights
                      + 4 * H_pad * A_pad                        # f32 output weights
                      + 4 * (2 * H_pad + A_pad)                  # f32 biases
                      + 4 * B * A_pad)                           # f32 out

    out = pl.pallas_call(
        _mlp_actor_kernel,
        out_shape=jax.ShapeDtypeStruct((B, A_pad), jnp.float32),
        grid=(pl.cdiv(B, TB),),
        in_specs=[
            pl.BlockSpec((TB, F), lambda i: (i, 0)),       # obs: tiled over batch
            pl.BlockSpec((F, H_pad), lambda i: (0, 0)),    # weights stay resident
            pl.BlockSpec((1, H_pad), lambda i: (0, 0)),
            pl.BlockSpec((H_pad, H_pad), lambda i: (0, 0)),
            pl.BlockSpec((1, H_pad), lambda i: (0, 0)),
            pl.BlockSpec((H_pad, A_pad), lambda i: (0, 0)),
            pl.BlockSpec((1, A_pad), lambda i: (0, 0)),
        ],
        out_specs=pl.BlockSpec((TB, A_pad), lambda i: (i, 0)),
        compiler_params=pltpu.CompilerParams(
            dimension_semantics=("parallel",),
            vmem_limit_bytes=VMEM_LIMIT_BYTES),
        cost_estimate=pl.CostEstimate(
            flops=flops, transcendentals=2 * B * H_pad,
            bytes_accessed=bytes_accessed),
    )(obs, w1, b1, w2, b2, w3, b3)
    return out[:, :action_dim]


@functools.partial(jax.jit, static_argnames=("action_dim",))
def box_actor_forward_linear(obs, w, b, *, action_dim):
    B, F = obs.shape
    A_pad = w.shape[1]
    TB = _batch_tile(B)

    out = pl.pallas_call(
        _linear_actor_kernel,
        out_shape=jax.ShapeDtypeStruct((B, A_pad), jnp.float32),
        grid=(pl.cdiv(B, TB),),
        in_specs=[
            pl.BlockSpec((TB, F), lambda i: (i, 0)),
            pl.BlockSpec((F, A_pad), lambda i: (0, 0)),
            pl.BlockSpec((1, A_pad), lambda i: (0, 0)),
        ],
        out_specs=pl.BlockSpec((TB, A_pad), lambda i: (i, 0)),
        compiler_params=pltpu.CompilerParams(
            dimension_semantics=("parallel",),
            vmem_limit_bytes=VMEM_LIMIT_BYTES),
        cost_estimate=pl.CostEstimate(
            flops=2 * B * F * A_pad,
            transcendentals=0,
            bytes_accessed=(B * F * 4 + F * A_pad * 4 + A_pad * 4
                            + B * A_pad * 4)),
    )(obs, w, b)
    return out[:, :action_dim]


# ----------------------------------------------------------------------------
# Parameter construction (PyTorch-Linear-style uniform init, lane-dim padding)
# ----------------------------------------------------------------------------
def _init_linear(key, fan_in, fan_out):
    kw, kb = jax.random.split(key)
    bound = 1.0 / jnp.sqrt(float(fan_in))
    # Stored as (in_features, out_features): pre-transposed vs. torch.
    w = jax.random.uniform(kw, (fan_in, fan_out), jnp.float32, -bound, bound)
    b = jax.random.uniform(kb, (1, fan_out), jnp.float32, -bound, bound)
    return w, b


def _pad_linear(w, b, *, pad_in, w_dtype):
    """Zero-pad the output dim (and optionally input dim) to multiples of 128."""
    fi, fo = w.shape
    fi_p = _round_up(fi, LANE) if pad_in else fi
    fo_p = _round_up(fo, LANE)
    w_p = jnp.pad(w, ((0, fi_p - fi), (0, fo_p - fo))).astype(w_dtype)
    b_p = jnp.pad(b, ((0, 0), (0, fo_p - fo))).astype(jnp.float32)
    return w_p, b_p


def make_box_actor_params(key, obs_shape, action_dim, feature_dim, hidden_dim):
    params = {"action_dim": int(action_dim)}
    if len(obs_shape) > 1:
        k0, _ = jax.random.split(key)
        w, b = _init_linear(k0, feature_dim, action_dim)
        # Single (output) layer: kept f32 for fidelity; only lane dim padded.
        params["w"], params["b"] = _pad_linear(w, b, pad_in=False,
                                               w_dtype=jnp.float32)
    else:
        k1, k2, k3, _ = jax.random.split(key, 4)
        w1, b1 = _init_linear(k1, feature_dim, hidden_dim)
        w2, b2 = _init_linear(k2, hidden_dim, hidden_dim)
        w3, b3 = _init_linear(k3, hidden_dim, action_dim)
        # Hidden layers bf16 (f32 accumulate); the first layer's input dim stays
        # unpadded (it must match the raw obs feature dim); inner dims padded to
        # 128 so every activation slab is lane-dense.  Zero padding is exact.
        params["w1"], params["b1"] = _pad_linear(w1, b1, pad_in=False,
                                                 w_dtype=jnp.bfloat16)
        params["w2"], params["b2"] = _pad_linear(w2, b2, pad_in=True,
                                                 w_dtype=jnp.bfloat16)
        params["w3"], params["b3"] = _pad_linear(w3, b3, pad_in=True,
                                                 w_dtype=jnp.float32)
    # nn.Parameter(th.ones(1, action_dim)); only used by get_policy_outputs.
    params["logstd"] = jnp.ones((1, action_dim), jnp.float32)
    return params


def box_actor_forward(params, obs, obs_shape):
    A = params["action_dim"]
    if len(obs_shape) > 1:
        return box_actor_forward_linear(obs, params["w"], params["b"],
                                        action_dim=A)
    return box_actor_forward_mlp(obs, params["w1"], params["b1"],
                                 params["w2"], params["b2"],
                                 params["w3"], params["b3"], action_dim=A)


def box_actor_get_policy_outputs(params, obs, obs_shape):
    mu = box_actor_forward(params, obs, obs_shape)
    # exp() of the (1, A) parameter once, broadcast lazily (not exp of (B, A)).
    std = jnp.broadcast_to(jnp.exp(params["logstd"]), mu.shape)
    return mu, std


# ----------------------------------------------------------------------------
# Reference (pure JAX, mirroring the kernel's precision choices)
# ----------------------------------------------------------------------------
def _ref_forward(params, obs, obs_shape):
    A = params["action_dim"]
    if len(obs_shape) > 1:
        mu = jnp.dot(obs, params["w"],
                     preferred_element_type=jnp.float32) + params["b"]
        return mu[:, :A]
    x = obs.astype(jnp.bfloat16)
    h1 = jnp.tanh(jnp.dot(x, params["w1"], preferred_element_type=jnp.float32)
                  + params["b1"]).astype(jnp.bfloat16)
    h2 = jnp.tanh(jnp.dot(h1, params["w2"], preferred_element_type=jnp.float32)
                  + params["b2"])
    mu = jnp.dot(h2, params["w3"], preferred_element_type=jnp.float32) + params["b3"]
    return mu[:, :A]


if __name__ == "__main__":
    key = jax.random.PRNGKey(0)

    # --- Vector-observation BoxActor (3-layer MLP branch). -------------------
    obs_shape = (32,)          # len == 1  -> MLP actor_mu
    feature_dim, hidden_dim, action_dim = 32, 64, 6

    pkey, okey, ikey = jax.random.split(key, 3)
    params = make_box_actor_params(pkey, obs_shape, action_dim, feature_dim,
                                   hidden_dim)

    # batch=10: single partial tile; batch=40: 2 grid steps with a partial tail.
    for batch in (10, 40):
        obs = jax.random.normal(jax.random.fold_in(okey, batch),
                                (batch, feature_dim), jnp.float32)
        mu = jax.block_until_ready(box_actor_forward(params, obs, obs_shape))
        ref = _ref_forward(params, obs, obs_shape)
        assert mu.shape == (batch, action_dim)
        # Tolerance covers possible matmul-precision-mode differences between
        # Mosaic and XLA for the f32 output layer.
        assert jnp.allclose(mu, ref, atol=5e-3, rtol=5e-3), \
            f"MLP branch mismatch (batch={batch})"

    mu2, std = box_actor_get_policy_outputs(params, obs, obs_shape)
    jax.block_until_ready((mu2, std))
    assert std.shape == mu2.shape

    # --- Image-observation BoxActor (single Linear over extracted features). -
    obs_shape_img = (4, 16, 16)    # len > 1 -> Linear(feature_dim -> action_dim)
    params_img = make_box_actor_params(ikey, obs_shape_img, action_dim,
                                       feature_dim, hidden_dim)
    feats = jax.random.normal(jax.random.PRNGKey(1), (10, feature_dim),
                              jnp.float32)
    mu_img = jax.block_until_ready(
        box_actor_forward(params_img, feats, obs_shape_img))
    ref_img = _ref_forward(params_img, feats, obs_shape_img)
    assert mu_img.shape == (10, action_dim)
    assert jnp.allclose(mu_img, ref_img, atol=5e-3, rtol=5e-3), \
        "Linear branch mismatch"

    print("KERNEL_OK")
</pallas_src>

<mosaic_0001>
module attributes {stable_mosaic.version = 11 : i64} {
  func.func @_mlp_actor_kernel(%arg0: i32, %arg1: memref<16x32xf32, #tpu.memory_space<vmem>>, %arg2: memref<32x128xbf16, #tpu.memory_space<vmem>>, %arg3: memref<1x128xf32, #tpu.memory_space<vmem>>, %arg4: memref<128x128xbf16, #tpu.memory_space<vmem>>, %arg5: memref<1x128xf32, #tpu.memory_space<vmem>>, %arg6: memref<128x128xf32, #tpu.memory_space<vmem>>, %arg7: memref<1x128xf32, #tpu.memory_space<vmem>>, %arg8: memref<16x128xf32, #tpu.memory_space<vmem>>) attributes {dimension_semantics = [#tpu.dimension_semantics<parallel>], iteration_bounds = array<i64: 1>, scalar_prefetch = 0 : i64, scratch_operands = 0 : i64, tpu.core_type = #tpu.core_type<tc>, window_params = [{transform_indices = @transform_0, window_bounds = array<i64: 16, 32>}, {pipeline_mode = #tpu.pipeline_mode<synchronous>, transform_indices = @transform_1, window_bounds = array<i64: 32, 128>}, {pipeline_mode = #tpu.pipeline_mode<synchronous>, transform_indices = @transform_2, window_bounds = array<i64: 1, 128>}, {pipeline_mode = #tpu.pipeline_mode<synchronous>, transform_indices = @transform_3, window_bounds = array<i64: 128, 128>}, {pipeline_mode = #tpu.pipeline_mode<synchronous>, transform_indices = @transform_4, window_bounds = array<i64: 1, 128>}, {pipeline_mode = #tpu.pipeline_mode<synchronous>, transform_indices = @transform_5, window_bounds = array<i64: 128, 128>}, {pipeline_mode = #tpu.pipeline_mode<synchronous>, transform_indices = @transform_6, window_bounds = array<i64: 1, 128>}, {transform_indices = @transform_7, window_bounds = array<i64: 16, 128>}]} {
    %c0 = arith.constant 0 : index
    %c0_0 = arith.constant 0 : index
    %0 = vector.load %arg1[%c0, %c0_0] : memref<16x32xf32, #tpu.memory_space<vmem>>, vector<16x32xf32>
    %1 = arith.truncf %0 : vector<16x32xf32> to vector<16x32xbf16>
    %c0_1 = arith.constant 0 : index
    %c0_2 = arith.constant 0 : index
    %2 = vector.load %arg2[%c0_1, %c0_2] : memref<32x128xbf16, #tpu.memory_space<vmem>>, vector<32x128xbf16>
    %cst = arith.constant dense<0.000000e+00> : vector<16x128xf32>
    %3 = tpu.matmul %1, %2, %cst {dimension_numbers = #tpu.dot_dimension_numbers<[1], [0], [0], [1], [0, 0, 1, 1], [], []>} : vector<16x32xbf16>, vector<32x128xbf16>, vector<16x128xf32> -> vector<16x128xf32>
    %c0_3 = arith.constant 0 : index
    %c0_4 = arith.constant 0 : index
    %4 = vector.load %arg3[%c0_3, %c0_4] : memref<1x128xf32, #tpu.memory_space<vmem>>, vector<1x128xf32>
    %5 = vector.broadcast %4 : vector<1x128xf32> to vector<16x128xf32>
    %6 = arith.addf %3, %5 : vector<16x128xf32>
    %7 = math.tanh %6 : vector<16x128xf32>
    %8 = arith.truncf %7 : vector<16x128xf32> to vector<16x128xbf16>
    %c0_5 = arith.constant 0 : index
    %c0_6 = arith.constant 0 : index
    %9 = vector.load %arg4[%c0_5, %c0_6] : memref<128x128xbf16, #tpu.memory_space<vmem>>, vector<128x128xbf16>
    %cst_7 = arith.constant dense<0.000000e+00> : vector<16x128xf32>
    %10 = tpu.matmul %8, %9, %cst_7 {dimension_numbers = #tpu.dot_dimension_numbers<[1], [0], [0], [1], [0, 0, 1, 1], [], []>} : vector<16x128xbf16>, vector<128x128xbf16>, vector<16x128xf32> -> vector<16x128xf32>
    %c0_8 = arith.constant 0 : index
    %c0_9 = arith.constant 0 : index
    %11 = vector.load %arg5[%c0_8, %c0_9] : memref<1x128xf32, #tpu.memory_space<vmem>>, vector<1x128xf32>
    %12 = vector.broadcast %11 : vector<1x128xf32> to vector<16x128xf32>
    %13 = arith.addf %10, %12 : vector<16x128xf32>
    %14 = math.tanh %13 : vector<16x128xf32>
    %c0_10 = arith.constant 0 : index
    %c0_11 = arith.constant 0 : index
    %15 = vector.load %arg6[%c0_10, %c0_11] : memref<128x128xf32, #tpu.memory_space<vmem>>, vector<128x128xf32>
    %cst_12 = arith.constant dense<0.000000e+00> : vector<16x128xf32>
    %16 = tpu.matmul %14, %15, %cst_12 {dimension_numbers = #tpu.dot_dimension_numbers<[1], [0], [0], [1], [0, 0, 1, 1], [], []>} : vector<16x128xf32>, vector<128x128xf32>, vector<16x128xf32> -> vector<16x128xf32>
    %c0_13 = arith.constant 0 : index
    %c0_14 = arith.constant 0 : index
    %17 = vector.load %arg7[%c0_13, %c0_14] : memref<1x128xf32, #tpu.memory_space<vmem>>, vector<1x128xf32>
    %18 = vector.broadcast %17 : vector<1x128xf32> to vector<16x128xf32>
    %19 = arith.addf %16, %18 : vector<16x128xf32>
    %c0_15 = arith.constant 0 : index
    %c0_16 = arith.constant 0 : index
    %20 = vector.load %arg8[%c0_15, %c0_16] : memref<16x128xf32, #tpu.memory_space<vmem>>, vector<16x128xf32>
    tpu.vector_store %arg8[%c0_15, %c0_16], %19 {strides = array<i32>} : memref<16x128xf32, #tpu.memory_space<vmem>>, vector<16x128xf32>,
    return
  }
  func.func @transform_0(%arg0: i32) -> (i32, i32) {
    %c0_i32 = arith.constant 0 : i32
    %c0_i32_0 = arith.constant 0 : i32
    return %arg0, %c0_i32 : i32, i32
  }
  func.func @transform_1(%arg0: i32) -> (i32, i32) {
    %c0_i32 = arith.constant 0 : i32
    %c0_i32_0 = arith.constant 0 : i32
    %c0_i32_1 = arith.constant 0 : i32
    return %c0_i32, %c0_i32_0 : i32, i32
  }
  func.func @transform_2(%arg0: i32) -> (i32, i32) {
    %c0_i32 = arith.constant 0 : i32
    %c0_i32_0 = arith.constant 0 : i32
    %c0_i32_1 = arith.constant 0 : i32
    return %c0_i32, %c0_i32_0 : i32, i32
  }
  func.func @transform_3(%arg0: i32) -> (i32, i32) {
    %c0_i32 = arith.constant 0 : i32
    %c0_i32_0 = arith.constant 0 : i32
    %c0_i32_1 = arith.constant 0 : i32
    return %c0_i32, %c0_i32_0 : i32, i32
  }
  func.func @transform_4(%arg0: i32) -> (i32, i32) {
    %c0_i32 = arith.constant 0 : i32
    %c0_i32_0 = arith.constant 0 : i32
    %c0_i32_1 = arith.constant 0 : i32
    return %c0_i32, %c0_i32_0 : i32, i32
  }
  func.func @transform_5(%arg0: i32) -> (i32, i32) {
    %c0_i32 = arith.constant 0 : i32
    %c0_i32_0 = arith.constant 0 : i32
    %c0_i32_1 = arith.constant 0 : i32
    return %c0_i32, %c0_i32_0 : i32, i32
  }
  func.func @transform_6(%arg0: i32) -> (i32, i32) {
    %c0_i32 = arith.constant 0 : i32
    %c0_i32_0 = arith.constant 0 : i32
    %c0_i32_1 = arith.constant 0 : i32
    return %c0_i32, %c0_i32_0 : i32, i32
  }
  func.func @transform_7(%arg0: i32) -> (i32, i32) {
    %c0_i32 = arith.constant 0 : i32
    %c0_i32_0 = arith.constant 0 : i32
    return %arg0, %c0_i32 : i32, i32
  }
}

</mosaic_0001>

<bundles_post_ra>
// kernel: box_actor_forward_mlp.1
= control target key start
LH: loop header
LB: loop body
LE: loop exit
PB: predicated region body
PF: predicated region fallthrough
CT: control target
= control target key end

     0   :  { %12 = vsyncpa [#allocation3], 0  ;;  %s681_s0 = inlined_call_operand.hbm [shape: f32[10,32], index: 0, kind: input, shape index: {}]   ;;  %s682_s1 = inlined_call_operand.hbm [shape: bf16[32,128], index: 1, kind: input, shape index: {}]   ;;  %s683_s2 = inlined_call_operand.vmem [shape: f32[1,128], index: 2, kind: input, shape index: {}]   ;;  %s684_s3 = inlined_call_operand.hbm [shape: bf16[128,128], index: 3, kind: input, shape index: {}]   ;;  %s685_s4 = inlined_call_operand.vmem [shape: f32[1,128], index: 4, kind: input, shape index: {}]   ;;  %s686_s5 = inlined_call_operand.hbm [shape: f32[128,128], index: 5, kind: input, shape index: {}]   ;;  %s687_s6 = inlined_call_operand.vmem [shape: f32[1,128], index: 6, kind: input, shape index: {}]   ;;  %s688_s7 = inlined_call_operand.vmem [shape: f32[10,128], index: 7, kind: output, shape index: {}]  }
   0x1   :  { %13 = vsyncpa [#allocation5], 0 }
   0x2   :  { %14 = vsyncpa [#allocation8], 0  ;;  %s598_s24 = smov [#allocation4]  }
   0x3   :  { %s32_s25 = sshll.u32 %s598_s24, 4  ;;  %s33_s25 = int_to_ptr.vmem [resolvable:$true] %s32_s25 }
   0x4   :  { %s520_s26 = scalar_lea.vmem %s33_s25, 256  ;;  %p525_p1 = scmp.lt.s32.totalorder %s33_s25, %s33_s25 }
   0x5   :  { %p521_p0 = scmp.ne.s32.totalorder %s33_s25, %s520_s26  ;;  %p526_p2 = scmp.lt.s32.totalorder %s520_s26, %s520_s26 }
   0x7   :  { %p527_p3 = por %p526_p2, %p525_p1 }
   0x9   :  { %p528_p4 = pnand %p527_p3, %p521_p0 }
   0xb   :  { %531 = shalt.err (!%p528_p4)
}
   0xc   :  { %s599_s27 = smov 64   ;;  %s600_s28 = smov 4  }
   0xd   :  { %38 = dma.hbm_to_vmem [thread:$0]  %s682_s1, 256, %s33_s25, [#allocation5], %s599_s27, %s599_s27, %s600_s28  }
   0xe   :  { %s601_s8 = smov [#allocation2]  }
   0xf   :  { %s20_s9 = sshll.u32 %s601_s8, 4  ;;  %s21_s9 = int_to_ptr.vmem [resolvable:$true] %s20_s9 }
  0x10   :  { %s540_s10 = scalar_lea.vmem %s21_s9, 256  ;;  %p545_p6 = scmp.lt.s32.totalorder %s21_s9, %s21_s9 }
  0x11   :  { %p541_p5 = scmp.ne.s32.totalorder %s21_s9, %s540_s10  ;;  %p546_p7 = scmp.lt.s32.totalorder %s540_s10, %s540_s10 }
  0x13   :  { %p547_p8 = por %p546_p7, %p545_p6 }
  0x15   :  { %p548_p9 = pnand %p547_p8, %p541_p5 }
  0x17   :  { %551 = shalt.err (!%p548_p9)
}
  0x18   :  { %s602_s11 = smov 128   ;;  %s603_s12 = smov 8  }
  0x19   :  { %26 = dma.hbm_to_vmem [thread:$0]  %s681_s0, 256, %s21_s9, [#allocation3], %s602_s11, %s602_s11, %s603_s12  }
  0x1a   :  { %s604_s15 = smov [#allocation6]   ;;  %s605_s17 = smov [#allocation7]  }
  0x1b   :  { %s46_s16 = sshll.u32 %s604_s15, 4  ;;  %s60_s1 = sshll.u32 %s605_s17, 4  ;;  %s47_s16 = int_to_ptr.vmem [resolvable:$true] %s46_s16  ;;  %s61_s1 = int_to_ptr.vmem [resolvable:$true] %s60_s1 }
  0x1c   :  { %s560_s18 = scalar_lea.vmem %s47_s16, 1024  ;;  %p565_p11 = scmp.lt.s32.totalorder %s47_s16, %s47_s16 }
  0x1d   :  { %p561_p10 = scmp.ne.s32.totalorder %s47_s16, %s560_s18  ;;  %p566_p12 = scmp.lt.s32.totalorder %s560_s18, %s560_s18 }
  0x1f   :  { %p567_p13 = por %p566_p12, %p565_p11 }
  0x21   :  { %p568_p0 = pnand %p567_p13, %p561_p10 }
  0x23   :  { %571 = shalt.err (!%p568_p0)
}
  0x24   :  { %52 = dma.hbm_to_vmem [thread:$0]  %s684_s3, 1024, %s47_s16, [#allocation5], %s599_s27, %s599_s27, %s600_s28  }
  0x25   :  { %s580_s0 = scalar_lea.vmem %s61_s1, 2048  ;;  %p585_p2 = scmp.lt.s32.totalorder %s61_s1, %s61_s1 }
  0x26   :  { %p581_p1 = scmp.ne.s32.totalorder %s61_s1, %s580_s0  ;;  %p586_p3 = scmp.lt.s32.totalorder %s580_s0, %s580_s0 }
  0x28   :  { %p587_p4 = por %p586_p3, %p585_p2 }
  0x2a   :  { %p588_p5 = pnand %p587_p4, %p581_p1 }
  0x2c   :  { %591 = shalt.err (!%p588_p5)
}
  0x2d   :  { %66 = dma.hbm_to_vmem [thread:$0]  %s686_s5, 2048, %s61_s1, [#allocation8], %s602_s11, %s602_s11, %s603_s12  }
  0x2e   :  { %592 = dma.done.wait [#allocation3], 256  }
  0x2f   :  { %593 = vsyncadd [#allocation3], 4294967040 }
  0x30   :  { %594 = dma.done.wait [#allocation5], 1280  }
  0x31   :  { %595 = vsyncadd [#allocation5], 4294966016 }
  0x32   :  { %596 = dma.done.wait [#allocation8], 2048  }
  0x33   :  { %597 = vsyncadd [#allocation8], 4294965248  ;;  %v606_v0 = vmov 0.0   ;;  %vm607_vm0 = vmmov 0   ;;  %v494_v1 = vld [vmem:[#allocation4 + $0x8] sm:$0xff]   ;;  %v495_v2 = vld [vmem:[#allocation4] sm:$0xff]  }
  0x34   :  { %421 = vmatprep.subr.bf16.mxu0 %v606_v0  ;;  %425 = vmatprep.mubr.msk.bf16.mxu0 %vm607_vm0, %v606_v0  ;;  %v82_v3 = vld [vmem:[#allocation2] sm:$0xff]  ;;  %v83_v4 = vld [vmem:[#allocation2 + $0x8] sm:$0xff]  ;;  %v496_v5 = vld [vmem:[#allocation6 + $0x38] sm:$0xff]   ;;  %vm108_vm1 = vcmask 261120  }
  0x35   :  { %429 = vmatprep.subr.bf16.mxu1 %v606_v0  ;;  %445 = vmatprep.mubr.msk.bf16.mxu1 %vm607_vm0, %v606_v0  ;;  %v497_v6 = vld [vmem:[#allocation6 + $0x30] sm:$0xff]   ;;  %v84_v7 = vpack.c.bf16 %v83_v4, %v82_v3  ;;  %v498_v8 = vld [vmem:[#allocation6 + $0x28] sm:$0xff]   ;;  %v499_v9 = vld [vmem:[#allocation6 + $0x20] sm:$0xff]  }
  0x36   :  { %422 = vmatpush3.bf16.msra.mxu0 %v494_v1  ;;  %430 = vmatpush3.bf16.msra.mxu1 %v496_v5  ;;  %v500_v10 = vld [vmem:[#allocation6 + $0x18] sm:$0xff]   ;;  %v501_v11 = vld [vmem:[#allocation6 + $0x10] sm:$0xff]   ;;  %v502_v12 = vld [vmem:[#allocation6 + $0x8] sm:$0xff]  }
  0x37   :  { %423 = vmatprep.subr.bf16.mxu0 %v606_v0  ;;  %431 = vmatprep.subr.bf16.mxu1 %v606_v0  ;;  %v503_v13 = vld [vmem:[#allocation6] sm:$0xff]   ;;  %v285_v14 = vld [vmem:[#allocation7 + $0x78] sm:$0xff]  ;;  %v284_v15 = vld [vmem:[#allocation7 + $0x70] sm:$0xff] }
  0x38   :  { %v283_v16 = vld [vmem:[#allocation7 + $0x68] sm:$0xff]  ;;  %v282_v17 = vld [vmem:[#allocation7 + $0x60] sm:$0xff]  ;;  %v281_v18 = vld [vmem:[#allocation7 + $0x58] sm:$0xff] }
  0x39   :  { %v280_v19 = vld [vmem:[#allocation7 + $0x50] sm:$0xff]  ;;  %v377_v20 = vld [vmem:[%s683_s2] ss:$0 sm:$0xff]  ;;  %v279_v30 = vld [vmem:[#allocation7 + $0x48] sm:$0xff] }
  0x3a   :  { %424 = vmatpush3.bf16.msra.mxu0 %v495_v2  ;;  %432 = vmatpush3.bf16.msra.mxu1 %v497_v6  ;;  %v278_v31 = vld [vmem:[#allocation7 + $0x40] sm:$0xff]  ;;  %v277_v32 = vld [vmem:[#allocation7 + $0x38] sm:$0xff]  ;;  %v276_v33 = vld [vmem:[#allocation7 + $0x30] sm:$0xff] }
  0x3b   :  { %433 = vmatprep.subr.bf16.mxu1 %v606_v0  ;;  %449 = vmatprep.subr.mxu0 %v285_v14  ;;  %v275_v34 = vld [vmem:[#allocation7 + $0x28] sm:$0xff]  ;;  %v274_v35 = vld [vmem:[#allocation7 + $0x20] sm:$0xff]  ;;  %v273_v36 = vld [vmem:[#allocation7 + $0x18] sm:$0xff] }
  0x3c   :  { %v272_v37 = vld [vmem:[#allocation7 + $0x10] sm:$0xff]  ;;  %v271_v38 = vld [vmem:[#allocation7 + $0x8] sm:$0xff]  ;;  %v270_v39 = vld [vmem:[#allocation7] sm:$0xff] }
  0x3d   :  { %426 = vmatmul.mubr.msk.bf16.vlgmr.msra.gmra.mxu0 %vm108_vm1, %v84_v7  ;;  %v381_v40 = vld [vmem:[%s685_s4] ss:$0 sm:$0xff] }
  0x3e   :  { %434 = vmatpush3.bf16.msra.mxu1 %v498_v8  ;;  %450 = vmatpush3.msra.mxu0 %v285_v14  ;;  %v390_v49 = vld [vmem:[%s687_s6] ss:$0 sm:$0xff] }
  0x3f   :  { %435 = vmatprep.subr.bf16.mxu1 %v606_v0  ;;  %451 = vmatprep.subr.mxu0 %v284_v15 }
  0x40   :  { %452 = vmatpush3.msra.mxu0 %v284_v15 }
  0x41   :  { %453 = vmatprep.subr.mxu0 %v283_v16 }
  0x42   :  { %436 = vmatpush3.bf16.msra.mxu1 %v499_v9  ;;  %454 = vmatpush3.msra.mxu0 %v283_v16 }
  0x43   :  { %437 = vmatprep.subr.bf16.mxu1 %v606_v0  ;;  %455 = vmatprep.subr.mxu0 %v282_v17 }
  0x44   :  { %456 = vmatpush3.msra.mxu0 %v282_v17 }
  0x45   :  { %457 = vmatprep.subr.mxu0 %v281_v18 }
  0x46   :  { %438 = vmatpush3.bf16.msra.mxu1 %v500_v10  ;;  %458 = vmatpush3.msra.mxu0 %v281_v18 }
  0x47   :  { %439 = vmatprep.subr.bf16.mxu1 %v606_v0  ;;  %459 = vmatprep.subr.mxu0 %v280_v19 }
  0x48   :  { %460 = vmatpush3.msra.mxu0 %v280_v19 }
  0x49   :  { %461 = vmatprep.subr.mxu0 %v279_v30 }
  0x4a   :  { %440 = vmatpush3.bf16.msra.mxu1 %v501_v11  ;;  %462 = vmatpush3.msra.mxu0 %v279_v30 }
  0x4b   :  { %441 = vmatprep.subr.bf16.mxu1 %v606_v0  ;;  %463 = vmatprep.subr.mxu0 %v278_v31 }
  0x4c   :  { %464 = vmatpush3.msra.mxu0 %v278_v31 }
  0x4d   :  { %465 = vmatprep.subr.mxu0 %v277_v32 }
  0x4e   :  { %442 = vmatpush3.bf16.msra.mxu1 %v502_v12  ;;  %466 = vmatpush3.msra.mxu0 %v277_v32 }
  0x4f   :  { %443 = vmatprep.subr.bf16.mxu1 %v606_v0  ;;  %467 = vmatprep.subr.mxu0 %v276_v33 }
  0x50   :  { %468 = vmatpush3.msra.mxu0 %v276_v33 }
  0x51   :  { %469 = vmatprep.subr.mxu0 %v275_v34 }
  0x52   :  { %444 = vmatpush3.bf16.msra.mxu1 %v503_v13  ;;  %470 = vmatpush3.msra.mxu0 %v275_v34 }
  0x53   :  { %471 = vmatprep.subr.mxu0 %v274_v35 }
  0x54   :  { %472 = vmatpush3.msra.mxu0 %v274_v35 }
  0x55   :  { %473 = vmatprep.subr.mxu0 %v273_v36 }
  0x56   :  { %474 = vmatpush3.msra.mxu0 %v273_v36 }
  0x57   :  { %475 = vmatprep.subr.mxu0 %v272_v37 }
  0x58   :  { %476 = vmatpush3.msra.mxu0 %v272_v37 }
  0x59   :  { %477 = vmatprep.subr.mxu0 %v271_v38 }
  0x5a   :  { %478 = vmatpush3.msra.mxu0 %v271_v38 }
  0x5b   :  { %479 = vmatprep.subr.mxu0 %v270_v39 }
  0x5c   :  { %480 = vmatpush3.msra.mxu0 %v270_v39 }
  0xfd   :  { %v146_v21 = vpop.f32.mrf.mxu0 }
  0xfe   :  { %v147_v22 = vadd.f32 %v377_v20, %v146_v21 }
  0xff   :  { %v427_v23 = vpop.f32.mrf.mxu0 }
 0x100   :  { %504 = vtanh.f32 %v147_v22 }
 0x101   :  { %v149_v24 = vpop.f32.mrf.mxu0 }
 0x102   :  { %v150_v25 = vadd.f32 %v377_v20, %v149_v24 }
 0x103   :  { %v428_v26 = vpop.f32.mrf.mxu0 }
 0x104   :  { %506 = vtanh.f32 %v150_v25 }
 0x10d   :  { %v505_v27 = vpop.eup %504 }
 0x111   :  { %v507_v28 = vpop.eup %506 }
 0x112   :  { %v155_v29 = vpack.c.bf16 %v507_v28, %v505_v27 }
 0x114   :  { %446 = vmatmul.mubr.bf16.vlgmr.msra.gmra.mxu1 %v155_v29 }
 0x1d4   :  { %v261_v41 = vpop.f32.mrf.mxu1 }
 0x1d5   :  { %v262_v42 = vadd.f32 %v381_v40, %v261_v41 }
 0x1d6   :  { %v447_v43 = vpop.f32.mrf.mxu1 }
 0x1d7   :  { %508 = vtanh.f32 %v262_v42 }
 0x1d8   :  { %v264_v44 = vpop.f32.mrf.mxu1 }
 0x1d9   :  { %v265_v45 = vadd.f32 %v381_v40, %v264_v44 }
 0x1da   :  { %v448_v46 = vpop.f32.mrf.mxu1 }
 0x1db   :  { %510 = vtanh.f32 %v265_v45 }
 0x1e4   :  { %v509_v47 = vpop.eup %508 }
 0x1e5   :  { %481 = vmatprep.mubr.f32.mxu0 %v509_v47 }
 0x1e8   :  { %v511_v48 = vpop.eup %510 }
 0x1e9   :  { %482 = vmatmul.mubr.f32.vlgmr.msra.gmra.mxu0 %v511_v48 }
 0x2a9   :  { %v483_v50 = vpop.f32.mrf.mxu0 }
 0x2aa   :  { %v365_v51 = vadd.f32 %v483_v50, %v390_v49 }
 0x2ab   :  { %v359_v52 = vpop.f32.mrf.mxu0 }
 0x2ac   :  { %369 = vst [vmem:[%s688_s7 + $0x8] sm:$0xff] %v365_v51  ;;  %v360_v53 = vadd.f32 %v390_v49, %v359_v52 }
 0x2ae   :  { %368 = vst [vmem:[%s688_s7] sm:$0xff] %v360_v53 }
 0x2af   :  { %374 = vsyncpa [#allocation3], 1 }
 0x2b0   :  { %375 = vsyncpa [#allocation5], 1 }
 0x2b1   :  { %376 = vsyncpa [#allocation8], 1 }

</bundles_post_ra>
